<compile_context>
chip_gen: v7x
topology: tpu7x:2x2x1
jax: 0.10.0
libtpu: 0.0.40
codegen_flags: <defaults>
</compile_context>

<pallas_src>
import functools

import jax
import jax.numpy as jnp
from jax.experimental import pallas as pl
from jax.experimental.pallas import tpu as pltpu


_ROW_ALIGN = 16  # sublane alignment for the im2col rows (covers f32=8, bf16=16)


def _round_up(n, m):
    return (n + m - 1) // m * m


def _packed_dims(input_channels, hidden_channels, kernel_size):
    """Row layout of the fused im2col / packed-weight contraction dimension."""
    kcx_pad = _round_up(kernel_size * input_channels, _ROW_ALIGN)
    kc = kcx_pad + _round_up(kernel_size * hidden_channels, _ROW_ALIGN)
    return kcx_pad, kc


# ---------------------------------------------------------------------------
# Pallas kernel: one grid step == one block of bt batch elements.
# Lane layout is batch-major: lane p = b_local * L + l (channels on sublanes).
# ---------------------------------------------------------------------------
def _convlstm_kernel(x_ref, h_ref, c_ref, w_ref, b_ref,
                     wci_ref, wcf_ref, wco_ref,
                     ch_ref, cc_ref, cols_ref,
                     *, L, K, kcx_pad, gate_dtype):
    # x_ref  : (Cin, Lt)        input slab
    # h_ref  : (Ch,  Lt)        hidden state slab
    # c_ref  : (Ch,  Lt)        cell state slab
    # w_ref  : (4*Ch, Kc)       fused gate weights (x taps | pad | h taps | pad)
    # b_ref  : (4*Ch, 1)        gate biases (f32, post-matmul add)
    # wci/wcf/wco_ref : (Ch, Lt) pre-tiled peephole weights (f32)
    # ch_ref : (Ch, Lt)         new hidden (working dtype)
    # cc_ref : (Ch, Lt)         new cell state (f32)
    # cols_ref: (Kc, Lt)        VMEM scratch, fused im2col matrix
    Ch, Lt = cc_ref.shape
    Kc = cols_ref.shape[0]
    pad = (K - 1) // 2
    mm_dtype = w_ref.dtype

    # Position of each lane inside its batch element (boundary masking).
    lane = jax.lax.broadcasted_iota(jnp.int32, (1, Lt), 1)
    l_in = lane % L

    def tap_block(v, rows_total):
        # Stack K shifted copies of v (rows t*C..(t+1)*C hold v[:, p + t-pad],
        # zero outside each batch element's [0, L) window), pad with zero rows
        # to `rows_total`.  Shifts use pltpu.roll (XLU); the full padded block
        # is rebuilt/stored every step -> no reliance on scratch persistence.
        C = v.shape[0]
        parts = []
        for t in range(K):                          # static unroll
            d = t - pad
            if d == 0:
                col = v
            else:
                col = pltpu.roll(v, shift=(-d) % Lt, axis=1)   # col[:,p]=v[:,(p+d)%Lt]
                valid = (l_in + d >= 0) & (l_in + d < L)
                col = jnp.where(valid, col, jnp.zeros_like(col))
            parts.append(col)
        n_pad = rows_total - K * C
        if n_pad > 0:
            parts.append(jnp.zeros((n_pad, Lt), v.dtype))
        blk = jnp.concatenate(parts, axis=0) if len(parts) > 1 else parts[0]
        return blk.astype(mm_dtype)

    # Two aligned full-sublane block stores (offsets/heights are multiples of
    # _ROW_ALIGN): x region [0, kcx_pad), h region [kcx_pad, Kc).
    cols_ref[0:kcx_pad, :] = tap_block(x_ref[...], kcx_pad)
    cols_ref[kcx_pad:Kc, :] = tap_block(h_ref[...], Kc - kcx_pad)

    # Single fused MXU matmul: (4*Ch, Kc) @ (Kc, Lt), f32 accumulation.
    pre = jnp.dot(w_ref[...], cols_ref[...], preferred_element_type=jnp.float32)
    pre = pre + b_ref[...].astype(jnp.float32)              # bias (lane broadcast)

    c = c_ref[...].astype(jnp.float32)
    wci = wci_ref[...]
    wcf = wcf_ref[...]
    wco = wco_ref[...]

    pre_i = pre[0 * Ch:1 * Ch]
    pre_f = pre[1 * Ch:2 * Ch]
    pre_g = pre[2 * Ch:3 * Ch]
    pre_o = pre[3 * Ch:4 * Ch]

    # Transcendentals optionally in bf16 (EUP packed) — accumulation stays f32.
    def sig(z):
        return jax.nn.sigmoid(z.astype(gate_dtype)).astype(jnp.float32)

    def tanh(z):
        return jnp.tanh(z.astype(gate_dtype)).astype(jnp.float32)

    ci = sig(pre_i + c * wci)
    cf = sig(pre_f + c * wcf)
    cc = cf * c + ci * tanh(pre_g)
    co = sig(pre_o + cc * wco)
    ch = co * tanh(cc)

    ch_ref[...] = ch.astype(ch_ref.dtype)
    cc_ref[...] = cc.astype(cc_ref.dtype)


# ---------------------------------------------------------------------------
# One-time parameter packing (hoist out of the per-timestep call / scan).
# ---------------------------------------------------------------------------
def pack_params(params, kernel_size, matmul_dtype=jnp.bfloat16):
    K = kernel_size
    Ch, Cin, _ = params["Wxi"].shape
    kcx_pad, Kc = _packed_dims(Cin, Ch, K)
    # Gate order (i, f, c, o); columns tap-major (t*C + c) to match the
    # in-kernel im2col row ordering; zero columns for alignment-pad rows.
    wx = jnp.stack([params["Wxi"], params["Wxf"], params["Wxc"], params["Wxo"]])
    wh = jnp.stack([params["Whi"], params["Whf"], params["Whc"], params["Who"]])
    wx = jnp.transpose(wx, (0, 1, 3, 2)).reshape(4 * Ch, K * Cin)
    wh = jnp.transpose(wh, (0, 1, 3, 2)).reshape(4 * Ch, K * Ch)
    wx = jnp.pad(wx, ((0, 0), (0, kcx_pad - K * Cin)))
    wh = jnp.pad(wh, ((0, 0), (0, (Kc - kcx_pad) - K * Ch)))
    w_all = jnp.concatenate([wx, wh], axis=1)                 # (4*Ch, Kc)
    b = jnp.concatenate([params["bxi"], params["bxf"], params["bxc"], params["bxo"]])
    return {
        "w": w_all.astype(matmul_dtype),
        "b": b[:, None].astype(jnp.float32),                  # (4*Ch, 1)
        "wci": params["Wci"][0].astype(jnp.float32),          # (Ch, L)
        "wcf": params["Wcf"][0].astype(jnp.float32),
        "wco": params["Wco"][0].astype(jnp.float32),
    }


def _pick_block_batch(B, L, est_fn, *, max_lanes=2048, vmem_budget=20 << 20,
                      min_grid=2):
    # Largest divisor of B giving a lane-dense (multiple-of-128) block that
    # fits the VMEM budget; prefer >=min_grid grid steps so v7x's two
    # TensorCores both get work.  Fallback: whole batch as one full-extent
    # block (legal, but non-multiple-of-128 lane widths degrade stores).
    cands = [d for d in range(1, B + 1)
             if B % d == 0 and (d * L) % 128 == 0
             and d * L <= max_lanes and est_fn(d * L) <= vmem_budget]
    if not cands:
        return B
    pref = [d for d in cands if B // d >= min_grid]
    return max(pref) if pref else max(cands)


# ---------------------------------------------------------------------------
# Wrapper: NCL <-> lane-dense layout plumbing + pallas_call.
# Under a recurrent scan, keep h/c in the lane-dense (C, B*L) layout across
# steps and only convert at the scan boundaries.
# ---------------------------------------------------------------------------
@functools.partial(jax.jit,
                   static_argnames=("kernel_size", "block_batch", "gate_dtype"))
def conv_lstm_cell(x, h, c, packed, *, kernel_size, block_batch=None,
                   gate_dtype=jnp.float32):
    B, Cin, L = x.shape
    Ch = h.shape[1]
    K = kernel_size
    kcx_pad, Kc = _packed_dims(Cin, Ch, K)
    assert packed["w"].shape == (4 * Ch, Kc)
    mm_dtype = packed["w"].dtype
    mm_bytes = packed["w"].dtype.itemsize
    out_bytes = h.dtype.itemsize

    def est(lanes):  # rough per-step VMEM bytes (double-buffered ins/outs)
        ins = (Cin + 2 * Ch) * lanes * 4 * 2
        outs = Ch * lanes * (out_bytes + 4) * 2
        wts = (4 * Ch * Kc * mm_bytes + 4 * Ch * 4 + 3 * Ch * lanes * 4) * 2
        scr = Kc * lanes * mm_bytes
        return ins + outs + wts + scr

    bt = _pick_block_batch(B, L, est) if block_batch is None else block_batch
    assert B % bt == 0
    Lt = bt * L
    vmem_limit = int(min(64 << 20, max(32 << 20, 2 * est(Lt))))

    # Lane-dense slabs: channels on sublanes, batch*length on lanes.
    xt = jnp.transpose(x, (1, 0, 2)).reshape(Cin, B * L)
    ht = jnp.transpose(h, (1, 0, 2)).reshape(Ch, B * L)
    ct = jnp.transpose(c, (1, 0, 2)).reshape(Ch, B * L)

    # Pre-tile peephole weights to the block lane width (resident blocks).
    wci_t = jnp.tile(packed["wci"], (1, bt))
    wcf_t = jnp.tile(packed["wcf"], (1, bt))
    wco_t = jnp.tile(packed["wco"], (1, bt))

    kernel = functools.partial(_convlstm_kernel, L=L, K=K, kcx_pad=kcx_pad,
                               gate_dtype=gate_dtype)

    blk = lambda rows: pl.BlockSpec((rows, Lt), lambda i: (0, i))
    full = lambda shp: pl.BlockSpec(shp, lambda i: (0,) * len(shp))

    ch_t, cc_t = pl.pallas_call(
        kernel,
        out_shape=(jax.ShapeDtypeStruct((Ch, B * L), h.dtype),      # new hidden
                   jax.ShapeDtypeStruct((Ch, B * L), jnp.float32)),  # new cell
        grid_spec=pltpu.PrefetchScalarGridSpec(
            num_scalar_prefetch=0,
            grid=(B // bt,),
            in_specs=[
                blk(Cin),                 # x slab
                blk(Ch),                  # h slab
                blk(Ch),                  # c slab
                full((4 * Ch, Kc)),       # fused gate weights, resident
                full((4 * Ch, 1)),        # bias, resident
                full((Ch, Lt)),           # Wci (pre-tiled), resident
                full((Ch, Lt)),           # Wcf
                full((Ch, Lt)),           # Wco
            ],
            out_specs=[blk(Ch), blk(Ch)],
            scratch_shapes=[pltpu.VMEM((Kc, Lt), mm_dtype)],   # fused im2col
        ),
        compiler_params=pltpu.CompilerParams(
            dimension_semantics=("parallel",),
            vmem_limit_bytes=vmem_limit),
    )(xt, ht, ct, packed["w"], packed["b"], wci_t, wcf_t, wco_t)

    # Back to (B, C, L).  ch is already in the working dtype; cc stays f32.
    ch_out = ch_t.reshape(Ch, B, L).transpose(1, 0, 2)
    cc_out = cc_t.reshape(Ch, B, L).transpose(1, 0, 2)
    return ch_out, cc_out


# ---------------------------------------------------------------------------
# Pure-JAX reference (mirrors the PyTorch forward exactly).
# ---------------------------------------------------------------------------
def _conv1d_ref(x, w, b=None, pad=1):
    y = jax.lax.conv_general_dilated(
        x, w, window_strides=(1,), padding=[(pad, pad)],
        dimension_numbers=("NCH", "OIH", "NCH"))
    if b is not None:
        y = y + b[None, :, None]
    return y


def conv_lstm_cell_ref(x, h, c, p, *, kernel_size):
    pad = (kernel_size - 1) // 2
    conv = functools.partial(_conv1d_ref, pad=pad)
    ci = jax.nn.sigmoid(conv(x, p["Wxi"], p["bxi"]) + conv(h, p["Whi"]) + c * p["Wci"])
    cf = jax.nn.sigmoid(conv(x, p["Wxf"], p["bxf"]) + conv(h, p["Whf"]) + c * p["Wcf"])
    cc = cf * c + ci * jnp.tanh(conv(x, p["Wxc"], p["bxc"]) + conv(h, p["Whc"]))
    co = jax.nn.sigmoid(conv(x, p["Wxo"], p["bxo"]) + conv(h, p["Who"]) + cc * p["Wco"])
    ch = co * jnp.tanh(cc)
    return ch, cc


# ---------------------------------------------------------------------------
# Deterministic parameter construction (shapes from ConvLSTMCell.__init__).
# ---------------------------------------------------------------------------
def make_params(key, input_channels, hidden_channels, kernel_size, length):
    ks = jax.random.split(key, 12)
    p = {}
    names_x = ["Wxi", "Wxf", "Wxc", "Wxo"]
    names_h = ["Whi", "Whf", "Whc", "Who"]
    for i, n in enumerate(names_x):
        p[n] = 0.1 * jax.random.normal(
            ks[i], (hidden_channels, input_channels, kernel_size), jnp.float32)
        p["b" + n[1:]] = 0.1 * jax.random.normal(
            ks[4 + i], (hidden_channels,), jnp.float32)
    for i, n in enumerate(names_h):
        p[n] = 0.1 * jax.random.normal(
            ks[8 + i], (hidden_channels, hidden_channels, kernel_size), jnp.float32)
    # Peephole weights Wci/Wcf/Wco (shape (1, hidden, L)); init_hidden creates
    # zeros — use small random values instead so the peephole path is exercised.
    kci, kcf, kco = jax.random.split(jax.random.fold_in(key, 99), 3)
    p["Wci"] = 0.1 * jax.random.normal(kci, (1, hidden_channels, length), jnp.float32)
    p["Wcf"] = 0.1 * jax.random.normal(kcf, (1, hidden_channels, length), jnp.float32)
    p["Wco"] = 0.1 * jax.random.normal(kco, (1, hidden_channels, length), jnp.float32)
    return p


if __name__ == "__main__":
    # B*L = 256 -> block-batch picker chooses bt=4 (128 lanes, 2 grid steps).
    B, Cin, Ch, L, K = 8, 4, 32, 32, 3  # hidden_channels % 2 == 0

    key = jax.random.PRNGKey(0)
    kx, kh, kc, kp = jax.random.split(key, 4)
    x = jax.random.normal(kx, (B, Cin, L), jnp.float32)
    h = jax.random.normal(kh, (B, Ch, L), jnp.float32)
    c = jax.random.normal(kc, (B, Ch, L), jnp.float32)
    params = make_params(kp, Cin, Ch, K, L)

    ch_r, cc_r = conv_lstm_cell_ref(x, h, c, params, kernel_size=K)

    # 1) Exact path: f32 MXU inputs + f32 gate math.
    packed_f32 = pack_params(params, K, matmul_dtype=jnp.float32)
    ch_k, cc_k = conv_lstm_cell(x, h, c, packed_f32, kernel_size=K)
    jax.block_until_ready((ch_k, cc_k))
    assert jnp.allclose(ch_k, ch_r, atol=1e-4, rtol=1e-4), "ch mismatch (f32)"
    assert jnp.allclose(cc_k, cc_r, atol=1e-4, rtol=1e-4), "cc mismatch (f32)"

    # 2) Fast MXU path (default): bf16 MXU inputs, f32 gate math.
    packed_bf16 = pack_params(params, K, matmul_dtype=jnp.bfloat16)
    ch_b, cc_b = conv_lstm_cell(x, h, c, packed_bf16, kernel_size=K)
    jax.block_until_ready((ch_b, cc_b))
    assert jnp.allclose(ch_b, ch_r, atol=3e-2, rtol=3e-2), "ch mismatch (bf16 mm)"
    assert jnp.allclose(cc_b, cc_r, atol=3e-2, rtol=3e-2), "cc mismatch (bf16 mm)"

    # 3) Fastest v6e/v7x path: bf16 MXU inputs + bf16 gate transcendentals
    #    (cell-state accumulation and storage remain f32).
    ch_g, cc_g = conv_lstm_cell(x, h, c, packed_bf16, kernel_size=K,
                                gate_dtype=jnp.bfloat16)
    jax.block_until_ready((ch_g, cc_g))
    assert jnp.allclose(ch_g, ch_r, atol=6e-2, rtol=6e-2), "ch mismatch (bf16 gates)"
    assert jnp.allclose(cc_g, cc_r, atol=6e-2, rtol=6e-2), "cc mismatch (bf16 gates)"

    print("KERNEL_OK")
</pallas_src>

<mosaic_0001>
module attributes {stable_mosaic.version = 11 : i64} {
  func.func @_convlstm_kernel(%arg0: i32, %arg1: memref<4x128xf32, #tpu.memory_space<vmem>>, %arg2: memref<32x128xf32, #tpu.memory_space<vmem>>, %arg3: memref<32x128xf32, #tpu.memory_space<vmem>>, %arg4: memref<128x112xf32, #tpu.memory_space<vmem>>, %arg5: memref<128x1xf32, #tpu.memory_space<vmem>>, %arg6: memref<32x128xf32, #tpu.memory_space<vmem>>, %arg7: memref<32x128xf32, #tpu.memory_space<vmem>>, %arg8: memref<32x128xf32, #tpu.memory_space<vmem>>, %arg9: memref<32x128xf32, #tpu.memory_space<vmem>>, %arg10: memref<32x128xf32, #tpu.memory_space<vmem>>, %arg11: memref<112x128xf32, #tpu.memory_space<vmem>>) attributes {dimension_semantics = [#tpu.dimension_semantics<parallel>], iteration_bounds = array<i64: 2>, scalar_prefetch = 0 : i64, scratch_operands = 1 : i64, tpu.core_type = #tpu.core_type<tc>, window_params = [{transform_indices = @transform_0, window_bounds = array<i64: 4, 128>}, {transform_indices = @transform_1, window_bounds = array<i64: 32, 128>}, {transform_indices = @transform_2, window_bounds = array<i64: 32, 128>}, {pipeline_mode = #tpu.pipeline_mode<synchronous>, transform_indices = @transform_3, window_bounds = array<i64: 128, 112>}, {pipeline_mode = #tpu.pipeline_mode<synchronous>, transform_indices = @transform_4, window_bounds = array<i64: 128, 1>}, {pipeline_mode = #tpu.pipeline_mode<synchronous>, transform_indices = @transform_5, window_bounds = array<i64: 32, 128>}, {pipeline_mode = #tpu.pipeline_mode<synchronous>, transform_indices = @transform_6, window_bounds = array<i64: 32, 128>}, {pipeline_mode = #tpu.pipeline_mode<synchronous>, transform_indices = @transform_7, window_bounds = array<i64: 32, 128>}, {transform_indices = @transform_8, window_bounds = array<i64: 32, 128>}, {transform_indices = @transform_9, window_bounds = array<i64: 32, 128>}]} {
    %0 = tpu.iota {dimensions = array<i32: 1>} : vector<1x128xi32>
    %c32_i32 = arith.constant 32 : i32
    %c0_i32 = arith.constant 0 : i32
    %1 = arith.cmpi eq, %c32_i32, %c0_i32 : i32
    %c1_i32 = arith.constant 1 : i32
    %2 = arith.select %1, %c1_i32, %c32_i32 : i32
    %3 = vector.broadcast %2 : i32 to vector<1x128xi32>
    %4 = arith.remsi %0, %3 : vector<1x128xi32>
    %c0_i32_0 = arith.constant 0 : i32
    %5 = vector.broadcast %c0_i32_0 : i32 to vector<1x128xi32>
    %6 = arith.cmpi ne, %4, %5 : vector<1x128xi32>
    %c0_i32_1 = arith.constant 0 : i32
    %7 = vector.broadcast %c0_i32_1 : i32 to vector<1x128xi32>
    %8 = arith.cmpi slt, %4, %7 : vector<1x128xi32>
    %c0_i32_2 = arith.constant 0 : i32
    %9 = arith.cmpi slt, %2, %c0_i32_2 : i32
    %10 = vector.broadcast %9 : i1 to vector<1x128xi1>
    %11 = vector.broadcast %10 : vector<1x128xi1> to vector<1x128xi1>
    %12 = arith.xori %8, %11 : vector<1x128xi1>
    %13 = arith.andi %12, %6 : vector<1x128xi1>
    %14 = vector.broadcast %2 : i32 to vector<1x128xi32>
    %15 = arith.addi %4, %14 : vector<1x128xi32>
    %16 = arith.select %13, %15, %4 : vector<1x128xi1>, vector<1x128xi32>
    %c0 = arith.constant 0 : index
    %c0_3 = arith.constant 0 : index
    %17 = vector.load %arg1[%c0, %c0_3] : memref<4x128xf32, #tpu.memory_space<vmem>>, vector<4x128xf32>
    %c1_i32_4 = arith.constant 1 : i32
    %18 = tpu.dynamic_rotate %17 by %c1_i32_4 dim 1 : vector<4x128xf32>, i32 -> vector<4x128xf32>
    %c-1_i32 = arith.constant -1 : i32
    %19 = vector.broadcast %c-1_i32 : i32 to vector<1x128xi32>
    %20 = arith.addi %16, %19 : vector<1x128xi32>
    %c0_i32_5 = arith.constant 0 : i32
    %21 = vector.broadcast %c0_i32_5 : i32 to vector<1x128xi32>
    %22 = arith.cmpi sge, %20, %21 : vector<1x128xi32>
    %c-1_i32_6 = arith.constant -1 : i32
    %23 = vector.broadcast %c-1_i32_6 : i32 to vector<1x128xi32>
    %24 = arith.addi %16, %23 : vector<1x128xi32>
    %c32_i32_7 = arith.constant 32 : i32
    %25 = vector.broadcast %c32_i32_7 : i32 to vector<1x128xi32>
    %26 = arith.cmpi slt, %24, %25 : vector<1x128xi32>
    %27 = arith.andi %22, %26 : vector<1x128xi1>
    %cst = arith.constant 0.000000e+00 : f32
    %28 = vector.broadcast %cst : f32 to vector<4x128xf32>
    %29 = vector.shape_cast %27 : vector<1x128xi1> to vector<1x128xi1>
    %30 = vector.broadcast %29 : vector<1x128xi1> to vector<4x128xi1>
    %31 = arith.select %30, %18, %28 : vector<4x128xi1>, vector<4x128xf32>
    %c127_i32 = arith.constant 127 : i32
    %32 = tpu.dynamic_rotate %17 by %c127_i32 dim 1 : vector<4x128xf32>, i32 -> vector<4x128xf32>
    %c1_i32_8 = arith.constant 1 : i32
    %33 = vector.broadcast %c1_i32_8 : i32 to vector<1x128xi32>
    %34 = arith.addi %16, %33 : vector<1x128xi32>
    %c0_i32_9 = arith.constant 0 : i32
    %35 = vector.broadcast %c0_i32_9 : i32 to vector<1x128xi32>
    %36 = arith.cmpi sge, %34, %35 : vector<1x128xi32>
    %c1_i32_10 = arith.constant 1 : i32
    %37 = vector.broadcast %c1_i32_10 : i32 to vector<1x128xi32>
    %38 = arith.addi %16, %37 : vector<1x128xi32>
    %c32_i32_11 = arith.constant 32 : i32
    %39 = vector.broadcast %c32_i32_11 : i32 to vector<1x128xi32>
    %40 = arith.cmpi slt, %38, %39 : vector<1x128xi32>
    %41 = arith.andi %36, %40 : vector<1x128xi1>
    %cst_12 = arith.constant 0.000000e+00 : f32
    %42 = vector.broadcast %cst_12 : f32 to vector<4x128xf32>
    %43 = vector.shape_cast %41 : vector<1x128xi1> to vector<1x128xi1>
    %44 = vector.broadcast %43 : vector<1x128xi1> to vector<4x128xi1>
    %45 = arith.select %44, %32, %42 : vector<4x128xi1>, vector<4x128xf32>
    %cst_13 = arith.constant 0.000000e+00 : f32
    %46 = vector.broadcast %cst_13 : f32 to vector<4x128xf32>
    %47 = tpu.concatenate %31, %17, %45, %46 in 0 : vector<4x128xf32>, vector<4x128xf32>, vector<4x128xf32>, vector<4x128xf32> -> vector<16x128xf32>
    %c0_14 = arith.constant 0 : index
    %c0_15 = arith.constant 0 : index
    %48 = vector.load %arg11[%c0_14, %c0_15] : memref<112x128xf32, #tpu.memory_space<vmem>>, vector<16x128xf32>
    tpu.vector_store %arg11[%c0_14, %c0_15], %47 {strides = array<i32>} : memref<112x128xf32, #tpu.memory_space<vmem>>, vector<16x128xf32>,
    %c0_16 = arith.constant 0 : index
    %c0_17 = arith.constant 0 : index
    %49 = vector.load %arg2[%c0_16, %c0_17] : memref<32x128xf32, #tpu.memory_space<vmem>>, vector<32x128xf32>
    %c1_i32_18 = arith.constant 1 : i32
    %50 = tpu.dynamic_rotate %49 by %c1_i32_18 dim 1 : vector<32x128xf32>, i32 -> vector<32x128xf32>
    %c-1_i32_19 = arith.constant -1 : i32
    %51 = vector.broadcast %c-1_i32_19 : i32 to vector<1x128xi32>
    %52 = arith.addi %16, %51 : vector<1x128xi32>
    %c0_i32_20 = arith.constant 0 : i32
    %53 = vector.broadcast %c0_i32_20 : i32 to vector<1x128xi32>
    %54 = arith.cmpi sge, %52, %53 : vector<1x128xi32>
    %c-1_i32_21 = arith.constant -1 : i32
    %55 = vector.broadcast %c-1_i32_21 : i32 to vector<1x128xi32>
    %56 = arith.addi %16, %55 : vector<1x128xi32>
    %c32_i32_22 = arith.constant 32 : i32
    %57 = vector.broadcast %c32_i32_22 : i32 to vector<1x128xi32>
    %58 = arith.cmpi slt, %56, %57 : vector<1x128xi32>
    %59 = arith.andi %54, %58 : vector<1x128xi1>
    %cst_23 = arith.constant 0.000000e+00 : f32
    %60 = vector.broadcast %cst_23 : f32 to vector<32x128xf32>
    %61 = vector.shape_cast %59 : vector<1x128xi1> to vector<1x128xi1>
    %62 = vector.broadcast %61 : vector<1x128xi1> to vector<32x128xi1>
    %63 = arith.select %62, %50, %60 : vector<32x128xi1>, vector<32x128xf32>
    %c127_i32_24 = arith.constant 127 : i32
    %64 = tpu.dynamic_rotate %49 by %c127_i32_24 dim 1 : vector<32x128xf32>, i32 -> vector<32x128xf32>
    %c1_i32_25 = arith.constant 1 : i32
    %65 = vector.broadcast %c1_i32_25 : i32 to vector<1x128xi32>
    %66 = arith.addi %16, %65 : vector<1x128xi32>
    %c0_i32_26 = arith.constant 0 : i32
    %67 = vector.broadcast %c0_i32_26 : i32 to vector<1x128xi32>
    %68 = arith.cmpi sge, %66, %67 : vector<1x128xi32>
    %c1_i32_27 = arith.constant 1 : i32
    %69 = vector.broadcast %c1_i32_27 : i32 to vector<1x128xi32>
    %70 = arith.addi %16, %69 : vector<1x128xi32>
    %c32_i32_28 = arith.constant 32 : i32
    %71 = vector.broadcast %c32_i32_28 : i32 to vector<1x128xi32>
    %72 = arith.cmpi slt, %70, %71 : vector<1x128xi32>
    %73 = arith.andi %68, %72 : vector<1x128xi1>
    %cst_29 = arith.constant 0.000000e+00 : f32
    %74 = vector.broadcast %cst_29 : f32 to vector<32x128xf32>
    %75 = vector.shape_cast %73 : vector<1x128xi1> to vector<1x128xi1>
    %76 = vector.broadcast %75 : vector<1x128xi1> to vector<32x128xi1>
    %77 = arith.select %76, %64, %74 : vector<32x128xi1>, vector<32x128xf32>
    %78 = tpu.concatenate %63, %49, %77 in 0 : vector<32x128xf32>, vector<32x128xf32>, vector<32x128xf32> -> vector<96x128xf32>
    %c16 = arith.constant 16 : index
    %c0_30 = arith.constant 0 : index
    %79 = vector.load %arg11[%c16, %c0_30] : memref<112x128xf32, #tpu.memory_space<vmem>>, vector<96x128xf32>
    tpu.vector_store %arg11[%c16, %c0_30], %78 {strides = array<i32>} : memref<112x128xf32, #tpu.memory_space<vmem>>, vector<96x128xf32>,
    %c0_31 = arith.constant 0 : index
    %c0_32 = arith.constant 0 : index
    %80 = vector.load %arg4[%c0_31, %c0_32] : memref<128x112xf32, #tpu.memory_space<vmem>>, vector<128x112xf32>
    %c0_33 = arith.constant 0 : index
    %c0_34 = arith.constant 0 : index
    %81 = vector.load %arg11[%c0_33, %c0_34] : memref<112x128xf32, #tpu.memory_space<vmem>>, vector<112x128xf32>
    %cst_35 = arith.constant dense<0.000000e+00> : vector<128x128xf32>
    %82 = tpu.matmul %80, %81, %cst_35 {dimension_numbers = #tpu.dot_dimension_numbers<[1], [0], [0], [1], [0, 0, 1, 1], [], []>} : vector<128x112xf32>, vector<112x128xf32>, vector<128x128xf32> -> vector<128x128xf32>
    %c0_36 = arith.constant 0 : index
    %c0_37 = arith.constant 0 : index
    %83 = vector.load %arg5[%c0_36, %c0_37] : memref<128x1xf32, #tpu.memory_space<vmem>>, vector<128x1xf32>
    %84 = vector.broadcast %83 : vector<128x1xf32> to vector<128x128xf32>
    %85 = arith.addf %82, %84 : vector<128x128xf32>
    %c0_38 = arith.constant 0 : index
    %c0_39 = arith.constant 0 : index
    %86 = vector.load %arg3[%c0_38, %c0_39] : memref<32x128xf32, #tpu.memory_space<vmem>>, vector<32x128xf32>
    %c0_40 = arith.constant 0 : index
    %c0_41 = arith.constant 0 : index
    %87 = vector.load %arg6[%c0_40, %c0_41] : memref<32x128xf32, #tpu.memory_space<vmem>>, vector<32x128xf32>
    %c0_42 = arith.constant 0 : index
    %c0_43 = arith.constant 0 : index
    %88 = vector.load %arg7[%c0_42, %c0_43] : memref<32x128xf32, #tpu.memory_space<vmem>>, vector<32x128xf32>
    %c0_44 = arith.constant 0 : index
    %c0_45 = arith.constant 0 : index
    %89 = vector.load %arg8[%c0_44, %c0_45] : memref<32x128xf32, #tpu.memory_space<vmem>>, vector<32x128xf32>
    %90 = vector.extract_strided_slice %85 {offsets = [0, 0], sizes = [32, 128], strides = [1, 1]} : vector<128x128xf32> to vector<32x128xf32>
    %91 = vector.extract_strided_slice %85 {offsets = [32, 0], sizes = [32, 128], strides = [1, 1]} : vector<128x128xf32> to vector<32x128xf32>
    %92 = vector.extract_strided_slice %85 {offsets = [64, 0], sizes = [32, 128], strides = [1, 1]} : vector<128x128xf32> to vector<32x128xf32>
    %93 = vector.extract_strided_slice %85 {offsets = [96, 0], sizes = [32, 128], strides = [1, 1]} : vector<128x128xf32> to vector<32x128xf32>
    %94 = arith.mulf %86, %87 : vector<32x128xf32>
    %95 = arith.addf %90, %94 : vector<32x128xf32>
    %96 = arith.negf %95 : vector<32x128xf32>
    %97 = math.exp %96 : vector<32x128xf32>
    %cst_46 = arith.constant 1.000000e+00 : f32
    %98 = vector.broadcast %cst_46 : f32 to vector<32x128xf32>
    %99 = arith.addf %98, %97 : vector<32x128xf32>
    %100 = arith.divf %98, %99 : vector<32x128xf32>
    %101 = arith.mulf %86, %88 : vector<32x128xf32>
    %102 = arith.addf %91, %101 : vector<32x128xf32>
    %103 = arith.negf %102 : vector<32x128xf32>
    %104 = math.exp %103 : vector<32x128xf32>
    %cst_47 = arith.constant 1.000000e+00 : f32
    %105 = vector.broadcast %cst_47 : f32 to vector<32x128xf32>
    %106 = arith.addf %105, %104 : vector<32x128xf32>
    %107 = arith.divf %105, %106 : vector<32x128xf32>
    %108 = arith.mulf %107, %86 : vector<32x128xf32>
    %109 = math.tanh %92 : vector<32x128xf32>
    %110 = arith.mulf %100, %109 : vector<32x128xf32>
    %111 = arith.addf %108, %110 : vector<32x128xf32>
    %112 = arith.mulf %111, %89 : vector<32x128xf32>
    %113 = arith.addf %93, %112 : vector<32x128xf32>
    %114 = arith.negf %113 : vector<32x128xf32>
    %115 = math.exp %114 : vector<32x128xf32>
    %cst_48 = arith.constant 1.000000e+00 : f32
    %116 = vector.broadcast %cst_48 : f32 to vector<32x128xf32>
    %117 = arith.addf %116, %115 : vector<32x128xf32>
    %118 = arith.divf %116, %117 : vector<32x128xf32>
    %119 = math.tanh %111 : vector<32x128xf32>
    %120 = arith.mulf %118, %119 : vector<32x128xf32>
    %c0_49 = arith.constant 0 : index
    %c0_50 = arith.constant 0 : index
    %121 = vector.load %arg9[%c0_49, %c0_50] : memref<32x128xf32, #tpu.memory_space<vmem>>, vector<32x128xf32>
    tpu.vector_store %arg9[%c0_49, %c0_50], %120 {strides = array<i32>} : memref<32x128xf32, #tpu.memory_space<vmem>>, vector<32x128xf32>,
    %c0_51 = arith.constant 0 : index
    %c0_52 = arith.constant 0 : index
    %122 = vector.load %arg10[%c0_51, %c0_52] : memref<32x128xf32, #tpu.memory_space<vmem>>, vector<32x128xf32>
    tpu.vector_store %arg10[%c0_51, %c0_52], %111 {strides = array<i32>} : memref<32x128xf32, #tpu.memory_space<vmem>>, vector<32x128xf32>,
    return
  }
  func.func @transform_0(%arg0: i32) -> (i32, i32) {
    %c0_i32 = arith.constant 0 : i32
    %c0_i32_0 = arith.constant 0 : i32
    return %c0_i32, %arg0 : i32, i32
  }
  func.func @transform_1(%arg0: i32) -> (i32, i32) {
    %c0_i32 = arith.constant 0 : i32
    %c0_i32_0 = arith.constant 0 : i32
    return %c0_i32, %arg0 : i32, i32
  }
  func.func @transform_2(%arg0: i32) -> (i32, i32) {
    %c0_i32 = arith.constant 0 : i32
    %c0_i32_0 = arith.constant 0 : i32
    return %c0_i32, %arg0 : i32, i32
  }
  func.func @transform_3(%arg0: i32) -> (i32, i32) {
    %c0_i32 = arith.constant 0 : i32
    %c0_i32_0 = arith.constant 0 : i32
    %c0_i32_1 = arith.constant 0 : i32
    return %c0_i32, %c0_i32_0 : i32, i32
  }
  func.func @transform_4(%arg0: i32) -> (i32, i32) {
    %c0_i32 = arith.constant 0 : i32
    %c0_i32_0 = arith.constant 0 : i32
    %c0_i32_1 = arith.constant 0 : i32
    return %c0_i32, %c0_i32_0 : i32, i32
  }
  func.func @transform_5(%arg0: i32) -> (i32, i32) {
    %c0_i32 = arith.constant 0 : i32
    %c0_i32_0 = arith.constant 0 : i32
    %c0_i32_1 = arith.constant 0 : i32
    return %c0_i32, %c0_i32_0 : i32, i32
  }
  func.func @transform_6(%arg0: i32) -> (i32, i32) {
    %c0_i32 = arith.constant 0 : i32
    %c0_i32_0 = arith.constant 0 : i32
    %c0_i32_1 = arith.constant 0 : i32
    return %c0_i32, %c0_i32_0 : i32, i32
  }
  func.func @transform_7(%arg0: i32) -> (i32, i32) {
    %c0_i32 = arith.constant 0 : i32
    %c0_i32_0 = arith.constant 0 : i32
    %c0_i32_1 = arith.constant 0 : i32
    return %c0_i32, %c0_i32_0 : i32, i32
  }
  func.func @transform_8(%arg0: i32) -> (i32, i32) {
    %c0_i32 = arith.constant 0 : i32
    %c0_i32_0 = arith.constant 0 : i32
    return %c0_i32, %arg0 : i32, i32
  }
  func.func @transform_9(%arg0: i32) -> (i32, i32) {
    %c0_i32 = arith.constant 0 : i32
    %c0_i32_0 = arith.constant 0 : i32
    return %c0_i32, %arg0 : i32, i32
  }
}

</mosaic_0001>

<bundles_post_ra>
// kernel: tile.24
= control target key start
LH: loop header
LB: loop body
LE: loop exit
PB: predicated region body
PF: predicated region fallthrough
CT: control target
= control target key end

     0   :  { %vm162_vm0 = vcmask 1047556   ;;  %s398_s10 = smov 96   ;;  %vm164_vm1 = vcmask 261120   ;;  %s400_s21 = smov 32   ;;  %vm201_vm2 = vcmask 1048320   ;;  %vm244_vm3 = vcmask 785920   ;;  %s579_s0 = inlined_call_operand.vmem [shape: f32[32,4,32], index: 0, kind: input, shape index: {}]   ;;  %s580_s1 = inlined_call_operand.vmem [shape: f32[32,128], index: 1, kind: output, shape index: {}]  }
   0x1   :  { %v376_v0 = vld [vmem:[%s579_s0 + $0x1c] sm:$0xf]  ;;  %v377_v1 = vld [vmem:[%s579_s0 + $0x18] sm:$0xf]  ;;  %v378_v2 = vld [vmem:[%s579_s0 + $0x14] sm:$0xf] }
   0x2   :  { %128 = vst [vmem:[#allocation0 + $0x38] sm:$0xf] %v376_v0  ;;  %133 = vst [vmem:[#allocation0 + $0x30] sm:$0xf] %v377_v1  ;;  %v379_v3 = vld [vmem:[%s579_s0 + $0x10] sm:$0xf] }
   0x3   :  { %138 = vst [vmem:[#allocation0 + $0x28] sm:$0xf] %v378_v2  ;;  %v380_v4 = vld [vmem:[%s579_s0 + $0xc] sm:$0xf]  ;;  %v381_v5 = vld [vmem:[%s579_s0 + $0x8] sm:$0xf] }
   0x4   :  { %143 = vst [vmem:[#allocation0 + $0x20] sm:$0xf] %v379_v3  ;;  %148 = vst [vmem:[#allocation0 + $0x18] sm:$0xf] %v380_v4  ;;  %v382_v6 = vld [vmem:[%s579_s0 + $0x4] sm:$0xf] }
   0x5   :  { %153 = vst [vmem:[#allocation0 + $0x10] sm:$0xf] %v381_v5  ;;  %v158_v7 = vld [vmem:[%s579_s0] sm:$0xf]  ;;  %157 = vst [vmem:[#allocation0 + $0x8] sm:$0xf] %v382_v6 }
   0x6   :  { %159 = vst [vmem:[#allocation0] sm:$0xf] %v158_v7  ;;  %v360_v8 = vld [vmem:[%s579_s0 + $0x5c] sm:$0xf]  ;;  %v361_v9 = vld [vmem:[%s579_s0 + $0x58] sm:$0xf] }
   0x7   :  { %v362_v10 = vld [vmem:[%s579_s0 + $0x54] sm:$0xf]  ;;  %48 = vst [vmem:[#allocation0 + $0xb8] sm:$0xf] %v360_v8  ;;  %53 = vst [vmem:[#allocation0 + $0xb0] sm:$0xf] %v361_v9 }
   0x8   :  { %58 = vst [vmem:[#allocation0 + $0xa8] sm:$0xf] %v362_v10  ;;  %v363_v11 = vld [vmem:[%s579_s0 + $0x50] sm:$0xf]  ;;  %v364_v12 = vld [vmem:[%s579_s0 + $0x4c] sm:$0xf] }
   0x9   :  { %v365_v13 = vld [vmem:[%s579_s0 + $0x48] sm:$0xf]  ;;  %63 = vst [vmem:[#allocation0 + $0xa0] sm:$0xf] %v363_v11  ;;  %68 = vst [vmem:[#allocation0 + $0x98] sm:$0xf] %v364_v12 }
   0xa   :  { %73 = vst [vmem:[#allocation0 + $0x90] sm:$0xf] %v365_v13  ;;  %v366_v14 = vld [vmem:[%s579_s0 + $0x44] sm:$0xf]  ;;  %v367_v15 = vld [vmem:[%s579_s0 + $0x40] sm:$0xf] }
   0xb   :  { %v368_v16 = vld [vmem:[%s579_s0 + $0x3c] sm:$0xf]  ;;  %78 = vst [vmem:[#allocation0 + $0x88] sm:$0xf] %v366_v14  ;;  %83 = vst [vmem:[#allocation0 + $0x80] sm:$0xf] %v367_v15 }
   0xc   :  { %88 = vst [vmem:[#allocation0 + $0x78] sm:$0xf] %v368_v16  ;;  %v369_v17 = vld [vmem:[%s579_s0 + $0x38] sm:$0xf]  ;;  %v370_v18 = vld [vmem:[%s579_s0 + $0x34] sm:$0xf] }
   0xd   :  { %v371_v19 = vld [vmem:[%s579_s0 + $0x30] sm:$0xf]  ;;  %93 = vst [vmem:[#allocation0 + $0x70] sm:$0xf] %v369_v17  ;;  %98 = vst [vmem:[#allocation0 + $0x68] sm:$0xf] %v370_v18 }
   0xe   :  { %103 = vst [vmem:[#allocation0 + $0x60] sm:$0xf] %v371_v19  ;;  %v372_v20 = vld [vmem:[%s579_s0 + $0x2c] sm:$0xf]  ;;  %v373_v21 = vld [vmem:[%s579_s0 + $0x28] sm:$0xf] }
   0xf   :  { %v374_v22 = vld [vmem:[%s579_s0 + $0x24] sm:$0xf]  ;;  %108 = vst [vmem:[#allocation0 + $0x58] sm:$0xf] %v372_v20  ;;  %113 = vst [vmem:[#allocation0 + $0x50] sm:$0xf] %v373_v21 }
  0x10   :  { %118 = vst [vmem:[#allocation0 + $0x48] sm:$0xf] %v374_v22  ;;  %v375_v23 = vld [vmem:[%s579_s0 + $0x20] sm:$0xf]  ;;  %v352_v24 = vld [vmem:[%s579_s0 + $0x7c] sm:$0xf] }
  0x11   :  { %v353_v25 = vld [vmem:[%s579_s0 + $0x78] sm:$0xf]  ;;  %123 = vst [vmem:[#allocation0 + $0x40] sm:$0xf] %v375_v23  ;;  %8 = vst [vmem:[#allocation0 + $0xf8] sm:$0xf] %v352_v24 }
  0x12   :  { %v196_v26 = vld [vmem:[#allocation0 + $0x3] ss:$8 sm:$0xf0]   ;;  %13 = vst [vmem:[#allocation0 + $0xf0] sm:$0xf] %v353_v25  ;;  %vm287_vm4 = vcmask 523520  }
  0x13   :  { %v354_v27 = vld [vmem:[%s579_s0 + $0x74] sm:$0xf]  ;;  %v194_v28 = vld [vmem:[#allocation0 + $0x3] ss:$8 sm:$0xf]  }
  0x14   :  { %18 = vst [vmem:[#allocation0 + $0xe8] sm:$0xf] %v354_v27  ;;  %v355_v29 = vld [vmem:[%s579_s0 + $0x70] sm:$0xf]  ;;  %v198_v30 = vsel %vm162_vm0, %v196_v26, %v194_v28  ;;  %v356_v31 = vld [vmem:[%s579_s0 + $0x6c] sm:$0xf] }
  0x15   :  { %23 = vst [vmem:[#allocation0 + $0xe0] sm:$0xf] %v355_v29  ;;  %v357_v32 = vld [vmem:[%s579_s0 + $0x68] sm:$0xf]  ;;  %v358_v33 = vld [vmem:[%s579_s0 + $0x64] sm:$0xf]  ;;  %199 = vrot.lane.b32.xlu0 %v198_v30, %s398_s10 }
  0x16   :  { %v217_v34 = vld [vmem:[#allocation0 + $0x83] ss:$8 sm:$0xf0]   ;;  %28 = vst [vmem:[#allocation0 + $0xd8] sm:$0xf] %v356_v31 }
  0x17   :  { %33 = vst [vmem:[#allocation0 + $0xd0] sm:$0xf] %v357_v32  ;;  %38 = vst [vmem:[#allocation0 + $0xc8] sm:$0xf] %v358_v33  ;;  %v359_v35 = vld [vmem:[%s579_s0 + $0x60] sm:$0xf] }
  0x18   :  { %v215_v36 = vld [vmem:[#allocation0 + $0x83] ss:$8 sm:$0xf]   ;;  %43 = vst [vmem:[#allocation0 + $0xc0] sm:$0xf] %v359_v35  ;;  %s399_s0 = smov 64  }
  0x19   :  { %v219_v37 = vsel %vm162_vm0, %v217_v34, %v215_v36  ;;  %v206_v38 = vld [vmem:[#allocation0 + $0x43] ss:$8 sm:$0xf0]   ;;  %v237_v39 = vld [vmem:[#allocation0 + $0x2] ss:$8 sm:$0xf]  }
  0x1a   :  { %220 = vrot.lane.b32.xlu1 %v219_v37, %s398_s10  ;;  %v204_v40 = vld [vmem:[#allocation0 + $0x43] ss:$8 sm:$0xf]   ;;  %v239_v41 = vld [vmem:[#allocation0 + $0x2] ss:$8 sm:$0xf0]  }
  0x1b   :  { %v208_v42 = vsel %vm162_vm0, %v206_v38, %v204_v40  ;;  %v249_v44 = vld [vmem:[#allocation0 + $0x42] ss:$8 sm:$0xf0]   ;;  %v241_v45 = vsel %vm162_vm0, %v239_v41, %v237_v39  ;;  %v280_v52 = vld [vmem:[#allocation0 + $0x1] ss:$8 sm:$0xf]  }
  0x1c   :  { %209 = vrot.lane.b32.xlu0 %v208_v42, %s398_s10  ;;  %v228_v43 = vld [vmem:[#allocation0 + $0xc3] ss:$8 sm:$0xf0]   ;;  %v247_v46 = vld [vmem:[#allocation0 + $0x42] ss:$8 sm:$0xf]  }
  0x1d   :  { %v258_v47 = vld [vmem:[#allocation0 + $0x82] ss:$8 sm:$0xf]   ;;  %v251_v53 = vsel %vm162_vm0, %v249_v44, %v247_v46  ;;  %v282_v55 = vld [vmem:[#allocation0 + $0x1] ss:$8 sm:$0xf0]  }
  0x1e   :  { %v260_v49 = vld [vmem:[#allocation0 + $0x82] ss:$8 sm:$0xf0]   ;;  %v160_v56 = vld [vmem:[#allocation0] ss:$8 sm:$0xf]   ;;  %v284_v4 = vsel %vm162_vm0, %v282_v55, %v280_v52 }
  0x1f   :  { %v226_v48 = vld [vmem:[#allocation0 + $0xc3] ss:$8 sm:$0xf]   ;;  %v271_v51 = vld [vmem:[#allocation0 + $0xc2] ss:$8 sm:$0xf0]   ;;  %v262_v54 = vsel %vm162_vm0, %v260_v49, %v258_v47 }
  0x20   :  { %v230_v50 = vsel %vm162_vm0, %v228_v43, %v226_v48  ;;  %242 = vrot.lane.b32.xlu0 %v241_v45, %s399_s0  ;;  %v269_v57 = vld [vmem:[#allocation0 + $0xc2] ss:$8 sm:$0xf]   ;;  %v161_v58 = vld [vmem:[#allocation0] ss:$8 sm:$0xf0]  }
  0x21   :  { %231 = vrot.lane.b32.xlu1 %v230_v50, %s398_s10  ;;  %v163_v59 = vsel %vm162_vm0, %v161_v58, %v160_v56  ;;  %v176_v60 = vld [vmem:[#allocation0 + $0x80] ss:$8 sm:$0xf]   ;;  %v290_v62 = vld [vmem:[#allocation0 + $0x41] ss:$8 sm:$0xf]   ;;  %v273_v3 = vsel %vm162_vm0, %v271_v51, %v269_v57 }
  0x22   :  { %v178_v61 = vld [vmem:[#allocation0 + $0x80] ss:$8 sm:$0xf0]   ;;  %v292_v63 = vld [vmem:[#allocation0 + $0x41] ss:$8 sm:$0xf0]  }
  0x23   :  { %165 = vst.msk [vmem:[%s580_s1] sm:$0xff] %vm164_vm1, %v163_v59   ;;  %v180_v0 = vsel %vm162_vm0, %v178_v61, %v176_v60  ;;  %v167_v1 = vld [vmem:[#allocation0 + $0x40] ss:$8 sm:$0xf]   ;;  %v294_v11 = vsel %vm162_vm0, %v292_v63, %v290_v62 }
  0x24   :  { %263 = vrot.lane.b32.xlu0 %v262_v54, %s399_s0  ;;  %v169_v2 = vld [vmem:[#allocation0 + $0x40] ss:$8 sm:$0xf0]   ;;  %384 = vst.msk [vmem:[%s580_s1 + $0x10] sm:$0xff] %vm164_vm1, %v180_v0  }
  0x25   :  { %252 = vrot.lane.b32.xlu1 %v251_v53, %s399_s0  ;;  %v171_v5 = vsel %vm162_vm0, %v169_v2, %v167_v1  ;;  %v185_v6 = vld [vmem:[#allocation0 + $0xc0] ss:$8 sm:$0xf]   ;;  %v301_v8 = vld [vmem:[#allocation0 + $0x81] ss:$8 sm:$0xf]  }
  0x26   :  { %v187_v7 = vld [vmem:[#allocation0 + $0xc0] ss:$8 sm:$0xf0]   ;;  %v303_v9 = vld [vmem:[#allocation0 + $0x81] ss:$8 sm:$0xf0]  }
  0x27   :  { %383 = vst.msk [vmem:[%s580_s1 + $0x8] sm:$0xff] %vm164_vm1, %v171_v5   ;;  %v189_v10 = vsel %vm162_vm0, %v187_v7, %v185_v6  ;;  %v305_v12 = vsel %vm162_vm0, %v303_v9, %v301_v8  ;;  %v312_v13 = vld [vmem:[#allocation0 + $0xc1] ss:$8 sm:$0xf]  }
  0x28   :  { %385 = vst.msk [vmem:[%s580_s1 + $0x18] sm:$0xff] %vm164_vm1, %v189_v10   ;;  %285 = vrot.lane.b32.xlu0 %v284_v4, %s400_s21  ;;  %v314_v14 = vld [vmem:[#allocation0 + $0xc1] ss:$8 sm:$0xf0]  }
  0x29   :  { %274 = vrot.lane.b32.xlu1 %v273_v3, %s399_s0  ;;  %v316_v15 = vsel %vm162_vm0, %v314_v14, %v312_v13 }
  0x2c   :  { %306 = vrot.lane.b32.xlu0 %v305_v12, %s400_s21 }
  0x2d   :  { %295 = vrot.lane.b32.xlu1 %v294_v11, %s400_s21 }
  0x31   :  { %317 = vrot.lane.b32.xlu1 %v316_v15, %s400_s21 }
  0x87   :  { %v200_v16 = vpop.permute.xlu0 %199  }
  0x88   :  { %202 = vst.msk [vmem:[%s580_s1] sm:$0xff] %vm201_vm2, %v200_v16  }
  0x8c   :  { %v221_v17 = vpop.permute.xlu1 %220  }
  0x8d   :  { %387 = vst.msk [vmem:[%s580_s1 + $0x10] sm:$0xff] %vm201_vm2, %v221_v17  }
  0x8e   :  { %v210_v18 = vpop.permute.xlu0 %209  }
  0x8f   :  { %386 = vst.msk [vmem:[%s580_s1 + $0x8] sm:$0xff] %vm201_vm2, %v210_v18  }
  0x92   :  { %v243_v20 = vpop.permute.xlu0 %242  }
  0x93   :  { %v232_v19 = vpop.permute.xlu1 %231   ;;  %245 = vst.msk [vmem:[%s580_s1] sm:$0xff] %vm244_vm3, %v243_v20  }
  0x94   :  { %388 = vst.msk [vmem:[%s580_s1 + $0x18] sm:$0xff] %vm201_vm2, %v232_v19  }
  0x96   :  { %v264_v22 = vpop.permute.xlu0 %263  }
  0x97   :  { %v253_v21 = vpop.permute.xlu1 %252   ;;  %390 = vst.msk [vmem:[%s580_s1 + $0x10] sm:$0xff] %vm244_vm3, %v264_v22  }
  0x98   :  { %389 = vst.msk [vmem:[%s580_s1 + $0x8] sm:$0xff] %vm244_vm3, %v253_v21  }
  0x9a   :  { %v286_v24 = vpop.permute.xlu0 %285  }
  0x9b   :  { %v275_v23 = vpop.permute.xlu1 %274   ;;  %288 = vst.msk [vmem:[%s580_s1] sm:$0xff] %vm287_vm4, %v286_v24  }
  0x9c   :  { %391 = vst.msk [vmem:[%s580_s1 + $0x18] sm:$0xff] %vm244_vm3, %v275_v23  }
  0x9e   :  { %v307_v26 = vpop.permute.xlu0 %306  }
  0x9f   :  { %v296_v25 = vpop.permute.xlu1 %295   ;;  %393 = vst.msk [vmem:[%s580_s1 + $0x10] sm:$0xff] %vm287_vm4, %v307_v26  }
  0xa0   :  { %392 = vst.msk [vmem:[%s580_s1 + $0x8] sm:$0xff] %vm287_vm4, %v296_v25  }
  0xa3   :  { %v318_v27 = vpop.permute.xlu1 %317  }
  0xa4   :  { %394 = vst.msk [vmem:[%s580_s1 + $0x18] sm:$0xff] %vm287_vm4, %v318_v27  }

// kernel: conv_lstm_cell.1
= control target key start
LH: loop header
LB: loop body
LE: loop exit
PB: predicated region body
PF: predicated region fallthrough
CT: control target
= control target key end

     0   :  { %s1611_s30 = smov 0   ;;  %s1613_s10 = smov 0   ;;  %s1914_s0 = inlined_call_operand.vmem [shape: f32[4,256], index: 0, kind: input, shape index: {}]   ;;  %s1915_s1 = inlined_call_operand.vmem [shape: f32[32,256], index: 1, kind: input, shape index: {}]   ;;  %s1916_s2 = inlined_call_operand.vmem [shape: f32[32,256], index: 2, kind: input, shape index: {}]   ;;  %s1917_s3 = inlined_call_operand.vmem [shape: f32[128,112], index: 3, kind: input, shape index: {}]   ;;  %s1918_s4 = inlined_call_operand.vmem [shape: f32[128,1], index: 4, kind: input, shape index: {}]   ;;  %s1919_s5 = inlined_call_operand.vmem [shape: f32[32,128], index: 5, kind: input, shape index: {}]   ;;  %s1920_s6 = inlined_call_operand.vmem [shape: f32[32,128], index: 6, kind: input, shape index: {}]   ;;  %s1921_s7 = inlined_call_operand.vmem [shape: f32[32,128], index: 7, kind: input, shape index: {}]   ;;  %s1922_s8 = inlined_call_operand.vmem [shape: f32[32,256], index: 8, kind: output, shape index: {0}]   ;;  %s1923_s9 = inlined_call_operand.vmem [shape: f32[32,256], index: 9, kind: output, shape index: {1}]  }
   0x1   :  { %s1615_s11 = smov 0  }
   0x2 LB: > { %s1627_s12 = sadd.s32 4294967295, %s1555_s11   ;;  %s1630_s13 = sadd.s32 1, %s1555_s11   ;;  %s1555_s11 = sphi %s1615_s11, %s1928_s11   ;;  %s1551_s10 = sphi %s1613_s10, %s1927_s10   ;;  %s1547_s30 = sphi %s1611_s30, %s1926_s30  }
   0x3   : > { %s50_s14 = ssub.s32 %s1555_s11, %s1630_s13  ;;  %s53_s15 = sadd.s32 1, %s1551_s10 }
   0x4   : > { %p51_p0 = scmp.eq.s32.totalorder %s50_s14, 0  ;;  %p60_p1 = scmp.ne.s32.totalorder %s1551_s10, %s1547_s30 }
   0x5   : > { %p61_p2 = scmp.eq.s32.totalorder %s1555_s11, 0  ;;  %p221_p3 = scmp.eq.s32.totalorder %s1627_s12, 1 }
   0x6   : > { %s1640_s16 = scalar_select %p51_p0, %s1551_s10, %s53_s15  }
   0x7   : > { %p1642_p4 = por %p61_p2, %p60_p1  ;;  %p1646_p5 = por %p221_p3, %p60_p1 }
   0x8   : > { %p1231_p6 = scmp.ge.s32.totalorder %s1555_s11, 2 }
   0xa   : > { %284 = sbr.rel (%p1231_p6) target bundleno = 31 (0x1f), region = 36 }
  0x11   : > { %294 = sbr.rel (!%p1642_p4) target bundleno = 24 (0x18), region = 44  ;;  %s296_s19 = sand.u32 (%p1642_p4), 1, %s1551_s10  }
  0x12   : > { %s1233_s20 = sshll.u32 (%p1642_p4), %s1555_s11, 3  ;;  %s1232_s21 = sshll.u32 (%p1642_p4), %s296_s19, 5 }
  0x13   : > { %s300_s24 = scalar_lea.vmem (%p1642_p4), %s1915_s1, %s1233_s20  ;;  %s298_s25 = scalar_lea.vmem (%p1642_p4), [#allocation3], %s1232_s21 }
  0x14   : > { %v334_v0 = vld [vmem:[%s300_s24] sm:$0xff] (%p1642_p4)  ;;  %v336_v1 = vld [vmem:[%s300_s24 + $0x10] sm:$0xff] (%p1642_p4) }
  0x15   : > { %v338_v2 = vld [vmem:[%s300_s24 + $0x20] sm:$0xff] (%p1642_p4)  ;;  %335 = vst [vmem:[%s298_s25] sm:$0xff] (%p1642_p4), %v334_v0  ;;  %337 = vst [vmem:[%s298_s25 + $0x8] sm:$0xff] (%p1642_p4), %v336_v1  ;;  %v340_v3 = vld [vmem:[%s300_s24 + $0x30] sm:$0xff] (%p1642_p4) }
  0x16   : > { %339 = vst [vmem:[%s298_s25 + $0x10] sm:$0xff] (%p1642_p4), %v338_v2  ;;  %341 = vst [vmem:[%s298_s25 + $0x18] sm:$0xff] (%p1642_p4), %v340_v3 }
  0x18 PF: > { %347 = sbr.rel (!%p1642_p4) target bundleno = 31 (0x1f), region = 82  ;;  %s349_s26 = sand.u32 (%p1642_p4), 1, %s1551_s10  }
  0x19   : > { %s1235_s27 = sshll.u32 (%p1642_p4), %s1555_s11, 3  ;;  %s1234_s28 = sshll.u32 (%p1642_p4), %s349_s26, 5 }
  0x1a   : > { %s353_s15 = scalar_lea.vmem (%p1642_p4), %s1916_s2, %s1235_s27  ;;  %s351_s19 = scalar_lea.vmem (%p1642_p4), [#allocation4], %s1234_s28 }
  0x1b   : > { %v387_v4 = vld [vmem:[%s353_s15] sm:$0xff] (%p1642_p4)  ;;  %v389_v5 = vld [vmem:[%s353_s15 + $0x10] sm:$0xff] (%p1642_p4) }
  0x1c   : > { %v391_v6 = vld [vmem:[%s353_s15 + $0x20] sm:$0xff] (%p1642_p4)  ;;  %388 = vst [vmem:[%s351_s19] sm:$0xff] (%p1642_p4), %v387_v4  ;;  %390 = vst [vmem:[%s351_s19 + $0x8] sm:$0xff] (%p1642_p4), %v389_v5  ;;  %v393_v7 = vld [vmem:[%s353_s15 + $0x30] sm:$0xff] (%p1642_p4) }
  0x1d   : > { %392 = vst [vmem:[%s351_s19 + $0x10] sm:$0xff] (%p1642_p4), %v391_v6  ;;  %394 = vst [vmem:[%s351_s19 + $0x18] sm:$0xff] (%p1642_p4), %v393_v7 }
  0x1f PF: > { %p1236_p7 = scmp.ge.s32.totalorder %s1555_s11, 1  ;;  %p399_p8 = scmp.lt.s32.totalorder %s1555_s11, 3 }
  0x21   : > { %p400_p9 = pnand %p1236_p7, %p399_p8 }
  0x22   : > { %p459_p10 = scmp.lt.s32.totalorder (!%p400_p9), %s1627_s12, 1  ;;  %s406_s17 = sand.u32 (!%p400_p9), 1, %s1547_s30   ;;  %v544_v17 = vld [vmem:[%s1917_s3] sm:$0xff] (!%p400_p9)  ;;  %vm670_vm0 = vcmask (!%p400_p9), 916480   ;;  %v575_v20 = vld [vmem:[%s1918_s4 + $0x8] sm:$0xff] (!%p400_p9)  ;;  %v1559_v21 = vmov (!%p400_p9), 0   ;;  %v463_v36 = vlaneseq (!%p400_p9) }
  0x23   : > { %403 = sbr.rel (%p400_p9) target bundleno = 506 (0x1fa), region = 120  ;;  %s1670_s21 = sshll.u32 (!%p400_p9), %s406_s17, 5  ;;  %v552_v18 = vld [vmem:[%s1917_s3 + $0x40] sm:$0xff] (!%p400_p9)  ;;  %1343 = vmatprep.mubr.msk.f32.mxu0 (!%p400_p9), %vm670_vm0, %v544_v17  ;;  %1468 = vset.pattern.permute.xlu1 (!%p400_p9), %v1559_v21  ;;  %v577_v22 = vld [vmem:[%s1918_s4 + $0x18] sm:$0xff] (!%p400_p9)  ;;  %v576_v23 = vld [vmem:[%s1918_s4 + $0x10] sm:$0xff] (!%p400_p9)  ;;  %vm499_vm2 = vcmask (!%p400_p9), 1043456  }
  0x24   : > { %s408_s26 = scalar_lea.vmem (!%p400_p9), [#allocation3], %s1670_s21  ;;  %s1557_s30 = smov (!%p400_p9), 1   ;;  %1355 = vmatprep.mubr.msk.f32.mxu1 (!%p400_p9), %vm670_vm0, %v552_v18  ;;  %v574_v19 = vld [vmem:[%s1918_s4] sm:$0xff] (!%p400_p9)  ;;  %1467 = vset.pattern.permute.xlu0 (!%p400_p9), %v1559_v21  ;;  %v579_v24 = vld [vmem:[%s1918_s4 + $0x28] sm:$0xff] (!%p400_p9)  ;;  %v581_v26 = vld [vmem:[%s1918_s4 + $0x38] sm:$0xff] (!%p400_p9)  ;;  %v464_v37 = vand.u32 (!%p400_p9), 127, %v463_v36 }
  0x25   : > { %v504_v8 = vld [vmem:[%s408_s26] sm:$0xff] (!%p400_p9)  ;;  %v505_v9 = vld [vmem:[%s408_s26 + $0x8] sm:$0xff] (!%p400_p9)  ;;  %v506_v10 = vld [vmem:[%s408_s26 + $0x10] sm:$0xff] (!%p400_p9)  ;;  %s1558_s11 = smov (!%p400_p9), 127   ;;  %vm1560_vm4 = vmmov (!%p400_p9), 1   ;;  %s415_s15 = scalar_lea.vmem (!%p400_p9), [#allocation4], %s1670_s21 }
  0x26   : > { %v1447_v12 = vpack.i.bf16 (!%p400_p9), %v505_v9, %v504_v8  ;;  %v1678_v13 = vpack.c.bf16 (!%p400_p9), %v505_v9, %v504_v8  ;;  %v507_v14 = vld [vmem:[%s408_s26 + $0x18] sm:$0xff] (!%p400_p9)  ;;  %v578_v25 = vld [vmem:[%s1918_s4 + $0x20] sm:$0xff] (!%p400_p9)  ;;  %v580_v27 = vld [vmem:[%s1918_s4 + $0x30] sm:$0xff] (!%p400_p9)  ;;  %v469_v38 = vand.u32 (!%p400_p9), 31, %v464_v37  ;;  %s1870_s24 = scalar_lea.vmem (!%p400_p9), [#allocation6], %s1670_s21  ;;  %s452_s27 = scalar_lea.vmem (!%p400_p9), [#allocation5], %s1670_s21 }
  0x27   : > { %v1452_v15 = vpack.i.bf16 (!%p400_p9), %v507_v14, %v506_v10  ;;  %v1682_v16 = vpack.c.bf16 (!%p400_p9), %v507_v14, %v506_v10  ;;  %v583_v28 = vld [vmem:[%s1918_s4 + $0x48] sm:$0xff] (!%p400_p9)  ;;  %v582_v29 = vld [vmem:[%s1918_s4 + $0x40] sm:$0xff] (!%p400_p9)  ;;  %v585_v30 = vld [vmem:[%s1918_s4 + $0x58] sm:$0xff] (!%p400_p9) }
  0x28   : > { %1448 = vrot.lane.b32.xlu1 (!%p400_p9), %v1447_v12, %s1557_s30  ;;  %v584_v31 = vld [vmem:[%s1918_s4 + $0x50] sm:$0xff] (!%p400_p9)  ;;  %v587_v32 = vld [vmem:[%s1918_s4 + $0x68] sm:$0xff] (!%p400_p9)  ;;  %v586_v33 = vld [vmem:[%s1918_s4 + $0x60] sm:$0xff] (!%p400_p9)  ;;  %v480_v39 = vadd.s32 (!%p400_p9), 4294967295, %v469_v38  ;;  %v489_v40 = vadd.s32 (!%p400_p9), 1, %v469_v38 }
  0x29   : > { %v589_v34 = vld [vmem:[%s1918_s4 + $0x78] sm:$0xff] (!%p400_p9)  ;;  %v588_v35 = vld [vmem:[%s1918_s4 + $0x70] sm:$0xff] (!%p400_p9)  ;;  %vm1368_vm5 = vmpackc.low (!%p400_p9), %vm499_vm2, %vm1560_vm4 }
  0x2a   : > { %s460_s20 = scalar_select %p459_p10, %s1627_s12, 1  ;;  %vm481_vm1 = vcmp.ge.s32.totalorder %v480_v39, 0  ;;  %vm491_vm3 = vcmp.lt.s32.totalorder %v489_v40, 32  ;;  %v545_v0 = vld [vmem:[%s1917_s3 + $0x8] sm:$0xff]  ;;  %v546_v2 = vld [vmem:[%s1917_s3 + $0x10] sm:$0xff]  ;;  %v547_v4 = vld [vmem:[%s1917_s3 + $0x18] sm:$0xff] }
  0x2b   : > { %vm1374_vm6 = vmpackc.low %vm481_vm1, %vm481_vm1  ;;  %v553_v1 = vld [vmem:[%s1917_s3 + $0x48] sm:$0xff]  ;;  %v554_v3 = vld [vmem:[%s1917_s3 + $0x50] sm:$0xff]  ;;  %s1272_s28 = sshll.u32 (%p1646_p5), %s1627_s12, 3 }
  0x2c   : > { %s1241_s22 = sshll.u32 %s460_s20, 2  ;;  %1453 = vrot.lane.b32.xlu1 %v1452_v15, %s1557_s30  ;;  %vm1394_vm7 = vmpackc.low %vm491_vm3, %vm491_vm3  ;;  %v555_v5 = vld [vmem:[%s1917_s3 + $0x58] sm:$0xff]  ;;  %v548_v6 = vld [vmem:[%s1917_s3 + $0x20] sm:$0xff]  ;;  %s1020_s21 = scalar_lea.vmem (%p1646_p5), %s1922_s8, %s1272_s28 }
  0x2d   : > { %s462_s25 = scalar_lea.vmem %s1914_s0, %s1241_s22  ;;  %v556_v7 = vld [vmem:[%s1917_s3 + $0x60] sm:$0xff]  ;;  %v549_v8 = vld [vmem:[%s1917_s3 + $0x28] sm:$0xff]  ;;  %v550_v10 = vld [vmem:[%s1917_s3 + $0x30] sm:$0xff] }
  0x2e   : > { %v1676_v11 = vld [vmem:[%s462_s25] sm:$0xf]  ;;  %v557_v9 = vld [vmem:[%s1917_s3 + $0x68] sm:$0xff] }
  0x2f   : > { %478 = vrot.lane.b32.xlu0 %v1676_v11, %s1557_s30  ;;  %v497_v42 = vrot.slane %v1676_v11, 4 }
  0x30   : > { %1463 = vrot.lane.b32.xlu1 %v1452_v15, %s1558_s11 }
  0x33   : > { %487 = vrot.lane.b32.xlu0 %v1676_v11, %s1558_s11  ;;  %v558_v11 = vld [vmem:[%s1917_s3 + $0x70] sm:$0xff] }
  0x34   : > { %597 = vperm.xlu1 %1468, %v575_v20   ;;  %v869_v20 = vld [vmem:[%s1919_s5 + $0x8] sm:$0xff] }
  0x37   : > { %1458 = vrot.lane.b32.xlu0 %v1447_v12, %s1558_s11  ;;  %v551_v12 = vld [vmem:[%s1917_s3 + $0x38] sm:$0xff] }
  0x38   : > { %602 = vperm.xlu1 %1468, %v576_v23   ;;  %v1817_v23 = vld [vmem:[%s415_s15] sm:$0xff] }
  0x3b   : > { %592 = vperm.xlu0 %1467, %v574_v19   ;;  %v1812_v19 = vld [vmem:[%s415_s15 + $0x8] sm:$0xff] }
  0x3c   : > { %612 = vperm.xlu1 %1468, %v578_v25   ;;  %v881_v25 = vmul.f32 %v869_v20, %v1812_v19 }
  0x3f   : > { %607 = vperm.xlu0 %1467, %v577_v22  }
  0x40   : > { %622 = vperm.xlu1 %1468, %v580_v27  }
  0x43   : > { %617 = vperm.xlu0 %1467, %v579_v24   ;;  %v868_v24 = vld [vmem:[%s1919_s5] sm:$0xff] }
  0x44   : > { %632 = vperm.xlu1 %1468, %v582_v29   ;;  %v1824_v29 = vld [vmem:[%s415_s15 + $0x18] sm:$0xff] }
  0x47   : > { %627 = vperm.xlu0 %1467, %v581_v26  }
  0x48   : > { %642 = vperm.xlu1 %1468, %v584_v31  }
  0x4b   : > { %637 = vperm.xlu0 %1467, %v583_v28   ;;  %v880_v28 = vmul.f32 %v868_v24, %v1817_v23 }
  0x4c   : > { %652 = vperm.xlu1 %1468, %v586_v33  }
  0x4f   : > { %647 = vperm.xlu0 %1467, %v585_v30   ;;  %v871_v30 = vld [vmem:[%s1919_s5 + $0x18] sm:$0xff] }
  0x50   : > { %662 = vperm.xlu1 %1468, %v588_v35   ;;  %v870_v35 = vld [vmem:[%s1919_s5 + $0x10] sm:$0xff]  ;;  %v883_v40 = vmul.f32 %v871_v30, %v1824_v29 }
  0x53   : > { %657 = vperm.xlu0 %1467, %v587_v32  }
  0x57   : > { %667 = vperm.xlu0 %1467, %v589_v34   ;;  %v1829_v34 = vld [vmem:[%s415_s15 + $0x10] sm:$0xff] }
  0x9a   : > { %v1449_v43 = vpop.permute.xlu1 %1448 }
  0x9b   : > { %v1451_v45 = vunpack.i.h.bf16 %v1449_v43  ;;  %v1450_v46 = vunpack.i.l.bf16 %v1449_v43 }
  0x9d   : > { %v1373_v52 = vpack.c.bf16 %v1451_v45, %v1450_v46  ;;  %v873_v45 = vld [vmem:[%s1920_s6 + $0x8] sm:$0xff] }
  0x9e   : > { %v1454_v50 = vpop.permute.xlu1 %1453 }
  0x9f   : > { %v1456_v53 = vunpack.i.h.bf16 %v1454_v50  ;;  %v1455_v54 = vunpack.i.l.bf16 %v1454_v50  ;;  %v872_v50 = vld [vmem:[%s1920_s6] sm:$0xff] }
  0xa1   : > { %v479_v41 = vpop.permute.xlu0 %478  ;;  %v1379_v55 = vpack.c.bf16 %v1456_v53, %v1455_v54  ;;  %v913_v54 = vmul.f32 %v873_v45, %v1812_v19 }
  0xa2   : > { %v486_v44 = vsel %vm481_vm1, %v479_v41, 0.0  ;;  %v1464_v59 = vpop.permute.xlu1 %1463 }
  0xa3   : > { %v500_v49 = vsel %vm499_vm2, %v486_v44, %v497_v42  ;;  %v1466_v61 = vunpack.i.h.bf16 %v1464_v59  ;;  %v1465_v62 = vunpack.i.l.bf16 %v1464_v59  ;;  %v882_v44 = vmul.f32 %v870_v35, %v1829_v34  ;;  %v875_v59 = vld [vmem:[%s1920_s6 + $0x18] sm:$0xff] }
  0xa5   : > { %v488_v47 = vpop.permute.xlu0 %487  ;;  %v1399_v63 = vpack.c.bf16 %v1466_v61, %v1465_v62 }
  0xa6   : > { %v495_v48 = vsel %vm491_vm3, %v488_v47, 0.0 }
  0xa7   : > { %v1367_v51 = vpack.c.bf16 %v495_v48, %v500_v49 }
  0xa9   : > { %1369 = vmatprep.subr.msk.bf16.mxu0 %vm1368_vm5, %v1367_v51  ;;  %1405 = vmatprep.subr.msk.bf16.mxu1 %vm1368_vm5, %v1367_v51  ;;  %v1459_v56 = vpop.permute.xlu0 %1458 }
  0xaa   : > { %1372 = vmatpush3.bf16.msk.msra.mxu0 %vm1368_vm5, %v1367_v51  ;;  %1412 = vmatpush3.bf16.msk.msra.mxu1 %vm1368_vm5, %v1367_v51  ;;  %v1461_v57 = vunpack.i.h.bf16 %v1459_v56  ;;  %v1460_v58 = vunpack.i.l.bf16 %v1459_v56 }
  0xab   : > { %1375 = vmatprep.subr.msk.bf16.mxu0 %vm1374_vm6, %v1373_v52  ;;  %1406 = vmatprep.subr.msk.bf16.mxu1 %vm1374_vm6, %v1373_v52 }
  0xac   : > { %v1393_v60 = vpack.c.bf16 %v1461_v57, %v1460_v58  ;;  %v912_v58 = vmul.f32 %v872_v50, %v1817_v23 }
  0xae   : > { %1378 = vmatpush3.bf16.msk.msra.mxu0 %vm1374_vm6, %v1373_v52  ;;  %1413 = vmatpush3.bf16.msk.msra.mxu1 %vm1374_vm6, %v1373_v52 }
  0xaf   : > { %1381 = vmatprep.subr.msk.bf16.mxu0 %vm1374_vm6, %v1379_v55  ;;  %1407 = vmatprep.subr.msk.bf16.mxu1 %vm1374_vm6, %v1379_v55 }
  0xb2   : > { %1384 = vmatpush3.bf16.msk.msra.mxu0 %vm1374_vm6, %v1379_v55  ;;  %1414 = vmatpush3.bf16.msk.msra.mxu1 %vm1374_vm6, %v1379_v55 }
  0xb3   : > { %1386 = vmatprep.subr.bf16.mxu0 %v1678_v13  ;;  %1408 = vmatprep.subr.bf16.mxu1 %v1678_v13  ;;  %v598_v15 = vpop.permute.xlu1 %597 }
  0xb6   : > { %1388 = vmatpush3.bf16.msra.mxu0 %v1678_v13  ;;  %1415 = vmatpush3.bf16.msra.mxu1 %v1678_v13  ;;  %v559_v13 = vld [vmem:[%s1917_s3 + $0x78] sm:$0xff] }
  0xb7   : > { %1390 = vmatprep.subr.bf16.mxu0 %v1682_v16  ;;  %1409 = vmatprep.subr.bf16.mxu1 %v1682_v16  ;;  %v603_v17 = vpop.permute.xlu1 %602 }
  0xba   : > { %1392 = vmatpush3.bf16.msra.mxu0 %v1682_v16  ;;  %1416 = vmatpush3.bf16.msra.mxu1 %v1682_v16  ;;  %v593_v14 = vpop.permute.xlu0 %592 }
  0xbb   : > { %1395 = vmatprep.subr.msk.bf16.mxu0 %vm1394_vm7, %v1393_v60  ;;  %1410 = vmatprep.subr.msk.bf16.mxu1 %vm1394_vm7, %v1393_v60  ;;  %v613_v21 = vpop.permute.xlu1 %612 }
  0xbe   : > { %1398 = vmatpush3.bf16.msk.msra.mxu0 %vm1394_vm7, %v1393_v60  ;;  %1417 = vmatpush3.bf16.msk.msra.mxu1 %vm1394_vm7, %v1393_v60  ;;  %v608_v16 = vpop.permute.xlu0 %607 }
  0xbf   : > { %1401 = vmatprep.subr.msk.bf16.mxu0 %vm1394_vm7, %v1399_v63  ;;  %1411 = vmatprep.subr.msk.bf16.mxu1 %vm1394_vm7, %v1399_v63  ;;  %v623_v37 = vpop.permute.xlu1 %622 }
  0xc2   : > { %1404 = vmatpush3.bf16.msk.msra.mxu0 %vm1394_vm7, %v1399_v63  ;;  %1418 = vmatpush3.bf16.msk.msra.mxu1 %vm1394_vm7, %v1399_v63  ;;  %v618_v18 = vpop.permute.xlu0 %617 }
  0xc5   : > { %1344 = vmatmul.mubr.msk.f32.vlgmr.msra.gmra.mrb[0].mxu0 %vm670_vm0, %v545_v0  ;;  %1356 = vmatmul.mubr.msk.f32.vlgmr.msra.gmra.mrb[0].mxu1 %vm670_vm0, %v553_v1  ;;  %v874_v0 = vld [vmem:[%s1920_s6 + $0x10] sm:$0xff] }
  0xc6   : > { %1346 = vmatprep.mubr.msk.f32.mxu0 %vm670_vm0, %v546_v2  ;;  %1358 = vmatprep.mubr.msk.f32.mxu1 %vm670_vm0, %v554_v3  ;;  %v628_v22 = vpop.permute.xlu0 %627 }
  0xc9   : > { %1347 = vmatmul.mubr.msk.f32.gmra.mrb[2].mxu0 %vm670_vm0, %v547_v4  ;;  %1359 = vmatmul.mubr.msk.f32.gmra.mrb[2].mxu1 %vm670_vm0, %v555_v5  ;;  %v633_v4 = vpop.permute.xlu1 %632 }
  0xca   : > { %1349 = vmatprep.mubr.msk.f32.mxu0 %vm670_vm0, %v548_v6  ;;  %1361 = vmatprep.mubr.msk.f32.mxu1 %vm670_vm0, %v556_v7  ;;  %v638_v38 = vpop.permute.xlu0 %637  ;;  %v915_v7 = vmul.f32 %v875_v59, %v1824_v29 }
  0xcd   : > { %1350 = vmatmul.mubr.msk.f32.gmra.mrb[4].mxu0 %vm670_vm0, %v549_v8  ;;  %1362 = vmatmul.mubr.msk.f32.gmra.mrb[4].mxu1 %vm670_vm0, %v557_v9 }
  0xce   : > { %1352 = vmatprep.mubr.msk.f32.mxu0 %vm670_vm0, %v550_v10  ;;  %1364 = vmatprep.mubr.msk.f32.mxu1 %vm670_vm0, %v558_v11  ;;  %v648_v5 = vpop.permute.xlu0 %647  ;;  %v914_v11 = vmul.f32 %v874_v0, %v1829_v34  ;;  %v877_v0 = vld [vmem:[%s1921_s7 + $0x8] sm:$0xff] }
  0xd1   : > { %1353 = vmatmul.mubr.msk.f32.gmra.mrb[6].mxu0 %vm670_vm0, %v551_v12  ;;  %1365 = vmatmul.mubr.msk.f32.gmra.mrb[6].mxu1 %vm670_vm0, %v559_v13 }
 0x198   : > { %v1345_v26 = vpop.f32.mrb[0].mxu0  ;;  %v1357_v27 = vpop.f32.mrb[0].mxu1 }
 0x199   : > { %v791_v31 = vadd.f32 %v1345_v26, %v598_v15  ;;  %v785_v32 = vpop.f32.mrb[1].mxu0  ;;  %v825_v33 = vpop.f32.mrb[1].mxu1  ;;  %v831_v1 = vadd.f32 %v1357_v27, %v638_v38 }
 0x19a   : > { %v786_v36 = vadd.f32 %v785_v32, %v593_v14  ;;  %v826_v12 = vadd.f32 %v825_v33, %v633_v4 }
 0x19b   : > { %v885_v39 = vadd.f32 %v881_v25, %v791_v31 }
 0x19c   : > { %v884_v41 = vadd.f32 %v880_v28, %v786_v36  ;;  %v1348_v42 = vpop.f32.mrb[2].mxu0  ;;  %v1360_v43 = vpop.f32.mrb[2].mxu1 }
 0x19d   : > { %v1259_v46 = vmul.f32 -1.442695, %v885_v39  ;;  %v801_v47 = vadd.f32 %v1348_v42, %v608_v16  ;;  %v795_v48 = vpop.f32.mrb[3].mxu0  ;;  %v835_v49 = vpop.f32.mrb[3].mxu1 }
 0x19e   : > { %v1258_v51 = vmul.f32 -1.442695, %v884_v41  ;;  %v796_v52 = vadd.f32 %v795_v48, %v603_v17  ;;  %v841_v17 = vadd.f32 %v1360_v43, %v648_v5  ;;  %v643_v28 = vpop.permute.xlu1 %642 }
 0x19f   : > { %1469 = vpow2.f32 %v1259_v46  ;;  %v887_v53 = vadd.f32 %v883_v40, %v801_v47  ;;  %v836_v32 = vadd.f32 %v835_v49, %v643_v28 }
 0x1a0   : > { %1471 = vpow2.f32 %v1258_v51  ;;  %v886_v55 = vadd.f32 %v882_v44, %v796_v52  ;;  %v1351_v56 = vpop.f32.mrb[4].mxu0  ;;  %v1843_v57 = vpop.f32.mrb[4].mxu1 }
 0x1a1   : > { %v1261_v60 = vmul.f32 -1.442695, %v887_v53  ;;  %v811_v61 = vadd.f32 %v1351_v56, %v618_v18  ;;  %v805_v62 = vpop.f32.mrb[5].mxu0  ;;  %v1849_v63 = vpop.f32.mrb[5].mxu1 }
 0x1a2   : > { %v1260_v2 = vmul.f32 -1.442695, %v886_v55  ;;  %v806_v3 = vadd.f32 %v805_v62, %v613_v21  ;;  %v658_v62 = vpop.permute.xlu0 %657 }
 0x1a3   : > { %1473 = vpow2.f32 %v1261_v60  ;;  %v917_v6 = vadd.f32 %v913_v54, %v811_v61 }
 0x1a4   : > { %1475 = vpow2.f32 %v1260_v2  ;;  %v916_v8 = vadd.f32 %v912_v58, %v806_v3  ;;  %v1354_v9 = vpop.f32.mrb[6].mxu0  ;;  %v1855_v10 = vpop.f32.mrb[6].mxu1  ;;  %v876_v3 = vld [vmem:[%s1921_s7] sm:$0xff] }
 0x1a5   : > { %v1263_v13 = vmul.f32 -1.442695, %v917_v6  ;;  %v821_v14 = vadd.f32 %v1354_v9, %v628_v22  ;;  %v815_v15 = vpop.f32.mrb[7].mxu0  ;;  %v1858_v16 = vpop.f32.mrb[7].mxu1  ;;  %1477 = vtanh.f32 %v831_v1 }
 0x1a6   : > { %v1262_v18 = vmul.f32 -1.442695, %v916_v8  ;;  %v816_v20 = vadd.f32 %v815_v15, %v623_v37  ;;  %v653_v6 = vpop.permute.xlu1 %652 }
 0x1a7   : > { %1479 = vpow2.f32 %v1263_v13  ;;  %v919_v21 = vadd.f32 %v915_v7, %v821_v14  ;;  %v851_v7 = vadd.f32 %v1843_v57, %v658_v62  ;;  %v668_v14 = vpop.permute.xlu0 %667 }
 0x1a8   : > { %1481 = vpow2.f32 %v1262_v18  ;;  %v918_v24 = vadd.f32 %v914_v11, %v816_v20  ;;  %v879_v11 = vld [vmem:[%s1921_s7 + $0x18] sm:$0xff]  ;;  %v861_v20 = vadd.f32 %v1855_v10, %v668_v14 }
 0x1a9   : > { %v1470_v25 = vpop.eup %1469  ;;  %1483 = vtanh.f32 %v826_v12  ;;  %v1265_v26 = vmul.f32 -1.442695, %v919_v21 }
 0x1aa   : > { %v1472_v27 = vpop.eup %1471  ;;  %v901_v30 = vadd.f32 1.0, %v1470_v25  ;;  %1485 = vtanh.f32 %v841_v17  ;;  %v1264_v31 = vmul.f32 -1.442695, %v918_v24  ;;  %v663_v25 = vpop.permute.xlu1 %662 }
 0x1ab   : > { %v900_v22 = vadd.f32 1.0, %v1472_v27  ;;  %1487 = vpow2.f32 %v1265_v26  ;;  %v856_v27 = vadd.f32 %v1858_v16, %v663_v25 }
 0x1ac   : > { %1489 = vrcp.f32 %v901_v30 }
 0x1ad   : > { %v1474_v33 = vpop.eup %1473  ;;  %1491 = vrcp.f32 %v900_v22 }
 0x1ae   : > { %v1476_v35 = vpop.eup %1475  ;;  %v903_v36 = vadd.f32 1.0, %v1474_v33  ;;  %1493 = vpow2.f32 %v1264_v31 }
 0x1af   : > { %v902_v37 = vadd.f32 1.0, %v1476_v35  ;;  %1495 = vtanh.f32 %v836_v32  ;;  %v1478_v38 = vpop.eup %1477 }
 0x1b0   : > { %1497 = vrcp.f32 %v903_v36 }
 0x1b1   : > { %v1480_v39 = vpop.eup %1479  ;;  %1499 = vrcp.f32 %v902_v37 }
 0x1b2   : > { %v1482_v40 = vpop.eup %1481  ;;  %v933_v41 = vadd.f32 1.0, %v1480_v39 }
 0x1b3   : > { %v1484_v42 = vpop.eup %1483  ;;  %v932_v43 = vadd.f32 1.0, %v1482_v40 }
 0x1b4   : > { %v1486_v44 = vpop.eup %1485  ;;  %1501 = vrcp.f32 %v933_v41 }
 0x1b5   : > { %v1488_v45 = vpop.eup %1487  ;;  %1503 = vrcp.f32 %v932_v43 }
 0x1b6   : > { %v1490_v46 = vpop.eup %1489  ;;  %v935_v47 = vadd.f32 1.0, %v1488_v45 }
 0x1b7   : > { %v1492_v48 = vpop.eup %1491  ;;  %v953_v49 = vmul.f32 %v1490_v46, %v1478_v38 }
 0x1b8   : > { %v1494_v50 = vpop.eup %1493  ;;  %v952_v51 = vmul.f32 %v1492_v48, %v1484_v42  ;;  %1505 = vrcp.f32 %v935_v47 }
 0x1b9   : > { %v1496_v52 = vpop.eup %1495  ;;  %v934_v53 = vadd.f32 1.0, %v1494_v50 }
 0x1ba   : > { %v1498_v54 = vpop.eup %1497 }
 0x1bb   : > { %v1500_v55 = vpop.eup %1499  ;;  %v955_v56 = vmul.f32 %v1498_v54, %v1486_v44  ;;  %1507 = vrcp.f32 %v934_v53 }
 0x1bc   : > { %v954_v58 = vmul.f32 %v1500_v55, %v1496_v52 }
 0x1be   : > { %v1502_v59 = vpop.eup %1501 }
 0x1bf   : > { %v1504_v60 = vpop.eup %1503  ;;  %v945_v61 = vmul.f32 %v1502_v59, %v1812_v19 }
 0x1c0   : > { %v944_v1 = vmul.f32 %v1504_v60, %v1817_v23  ;;  %v846_v23 = vadd.f32 %v1849_v63, %v653_v6  ;;  %v878_v63 = vld [vmem:[%s1921_s7 + $0x10] sm:$0xff] }
 0x1c1   : > { %v957_v2 = vadd.f32 %v953_v49, %v945_v61 }
 0x1c2   : > { %v1506_v4 = vpop.eup %1505  ;;  %v956_v5 = vadd.f32 %v952_v51, %v944_v1 }
 0x1c3   : > { %v961_v8 = vmul.f32 %v957_v2, %v877_v0  ;;  %1005 = vst [vmem:[%s1870_s24 + $0x8] sm:$0xff] %v957_v2  ;;  %v947_v19 = vmul.f32 %v1506_v4, %v1824_v29 }
 0x1c4   : > { %v960_v9 = vmul.f32 %v956_v5, %v876_v3  ;;  %1004 = vst [vmem:[%s1870_s24] sm:$0xff] %v956_v5 }
 0x1c5   : > { %v1508_v12 = vpop.eup %1507  ;;  %v965_v13 = vadd.f32 %v961_v8, %v851_v7  ;;  %v959_v57 = vadd.f32 %v955_v56, %v947_v19 }
 0x1c6   : > { %v964_v15 = vadd.f32 %v960_v9, %v846_v23  ;;  %v946_v17 = vmul.f32 %v1508_v12, %v1829_v34 }
 0x1c7   : > { %v1267_v18 = vmul.f32 -1.442695, %v965_v13  ;;  %v963_v29 = vmul.f32 %v959_v57, %v879_v11  ;;  %1007 = vst [vmem:[%s1870_s24 + $0x18] sm:$0xff] %v959_v57 }
 0x1c8   : > { %v1266_v21 = vmul.f32 -1.442695, %v964_v15  ;;  %v958_v24 = vadd.f32 %v954_v58, %v946_v17 }
 0x1c9   : > { %1509 = vpow2.f32 %v1267_v18  ;;  %v967_v26 = vadd.f32 %v963_v29, %v861_v20 }
 0x1ca   : > { %1511 = vpow2.f32 %v1266_v21  ;;  %v962_v28 = vmul.f32 %v958_v24, %v878_v63  ;;  %1006 = vst [vmem:[%s1870_s24 + $0x10] sm:$0xff] %v958_v24 }
 0x1cb   : > { %v1269_v34 = vmul.f32 -1.442695, %v967_v26 }
 0x1cc   : > { %v966_v30 = vadd.f32 %v962_v28, %v856_v27 }
 0x1cd   : > { %1513 = vpow2.f32 %v1269_v34 }
 0x1ce   : > { %v1268_v10 = vmul.f32 -1.442695, %v966_v30 }
 0x1d0   : > { %1515 = vpow2.f32 %v1268_v10 }
 0x1d1   : > { %1517 = vtanh.f32 %v957_v2 }
 0x1d2   : > { %1519 = vtanh.f32 %v956_v5 }
 0x1d3   : > { %v1510_v31 = vpop.eup %1509 }
 0x1d4   : > { %v1512_v22 = vpop.eup %1511  ;;  %v981_v32 = vadd.f32 1.0, %v1510_v31 }
 0x1d5   : > { %v980_v33 = vadd.f32 1.0, %v1512_v22 }
 0x1d6   : > { %1521 = vrcp.f32 %v981_v32 }
 0x1d7   : > { %v1514_v35 = vpop.eup %1513  ;;  %1523 = vrcp.f32 %v980_v33 }
 0x1d8   : > { %v983_v36 = vadd.f32 1.0, %v1514_v35  ;;  %1525 = vtanh.f32 %v959_v57 }
 0x1da   : > { %v1516_v16 = vpop.eup %1515  ;;  %1527 = vrcp.f32 %v983_v36 }
 0x1db   : > { %v982_v37 = vadd.f32 1.0, %v1516_v16  ;;  %1529 = vtanh.f32 %v958_v24  ;;  %v1518_v38 = vpop.eup %1517 }
 0x1dc   : > { %v1520_v39 = vpop.eup %1519 }
 0x1dd   : > { %1531 = vrcp.f32 %v982_v37 }
 0x1e0   : > { %v1522_v40 = vpop.eup %1521 }
 0x1e1   : > { %v1524_v41 = vpop.eup %1523  ;;  %v997_v42 = vmul.f32 %v1522_v40, %v1518_v38 }
 0x1e2   : > { %v996_v43 = vmul.f32 %v1524_v41, %v1520_v39  ;;  %v1526_v44 = vpop.eup %1525 }
 0x1e3   : > { %1001 = vst [vmem:[%s452_s27 + $0x8] sm:$0xff] %v997_v42 }
 0x1e4   : > { %v1528_v45 = vpop.eup %1527  ;;  %1000 = vst [vmem:[%s452_s27] sm:$0xff] %v996_v43  ;;  %1018 = sbr.rel (!%p1646_p5) target bundleno = 499 (0x1f3), region = 132 }
 0x1e5   : > { %v999_v46 = vmul.f32 %v1528_v45, %v1526_v44  ;;  %v1530_v47 = vpop.eup %1529 }
 0x1e7   : > { %v1532_v48 = vpop.eup %1531  ;;  %1003 = vst [vmem:[%s452_s27 + $0x18] sm:$0xff] %v999_v46 }
 0x1e8   : > { %v998_v49 = vmul.f32 %v1532_v48, %v1530_v47 }
 0x1ea   : > { %1002 = vst [vmem:[%s452_s27 + $0x10] sm:$0xff] %v998_v49  ;;  %v1056_v51 = vld [vmem:[%s452_s27 + $0x8] sm:$0xff] (%p1646_p5) }
 0x1eb   : > { %v1054_v50 = vld [vmem:[%s452_s27] sm:$0xff]  ;;  %1057 = vst [vmem:[%s1020_s21 + $0x10] sm:$0xff] %v1056_v51 }
 0x1ec   : > { %1055 = vst [vmem:[%s1020_s21] sm:$0xff] %v1054_v50 }
 0x1ee   : > { %v1060_v53 = vld [vmem:[%s452_s27 + $0x18] sm:$0xff] }
 0x1ef   : > { %1061 = vst [vmem:[%s1020_s21 + $0x30] sm:$0xff] %v1060_v53 }
 0x1f1   : > { %v1058_v52 = vld [vmem:[%s452_s27 + $0x10] sm:$0xff] }
 0x1f2   : > { %1059 = vst [vmem:[%s1020_s21 + $0x20] sm:$0xff] %v1058_v52 }
 0x1f3 PF: > { %1067 = sbr.rel (!%p1646_p5) target bundleno = 506 (0x1fa), region = 170  ;;  %s1273_s15 = sshll.u32 (%p1646_p5), %s1627_s12, 3  ;;  %v1103_v54 = vld [vmem:[%s1870_s24] sm:$0xff] (%p1646_p5)  ;;  %v1105_v55 = vld [vmem:[%s1870_s24 + $0x8] sm:$0xff] (%p1646_p5)  ;;  %v1107_v56 = vld [vmem:[%s1870_s24 + $0x10] sm:$0xff] (%p1646_p5) }
 0x1f4   : > { %s1069_s20 = scalar_lea.vmem (%p1646_p5), %s1923_s9, %s1273_s15  ;;  %v1109_v58 = vld [vmem:[%s1870_s24 + $0x18] sm:$0xff] (%p1646_p5) }
 0x1f5   : > { %1104 = vst [vmem:[%s1069_s20] sm:$0xff] (%p1646_p5), %v1103_v54  ;;  %1106 = vst [vmem:[%s1069_s20 + $0x10] sm:$0xff] (%p1646_p5), %v1105_v55 }
 0x1f6   : > { %1108 = vst [vmem:[%s1069_s20 + $0x20] sm:$0xff] (%p1646_p5), %v1107_v56  ;;  %1110 = vst [vmem:[%s1069_s20 + $0x30] sm:$0xff] (%p1646_p5), %v1109_v58 }
 0x1fa PF: > { %p17_p11 = scmp.ge.s32.totalorder %s1630_s13, 4   ;;  %s1926_s30 = smov %s1551_s10 }
 0x1fb   : > { %s1927_s10 = smov %s1640_s16  ;;  %s1928_s11 = smov %s1630_s13 }
 0x1fc   :  { %19 = sbr.rel (!%p17_p11) target bundleno = 2 (0x2), region = 262 }

</bundles_post_ra>
